<compile_context>
chip_gen: v5e
topology: v5e:2x2
jax: 0.10.0
libtpu: 0.0.40
codegen_flags: <defaults>
</compile_context>

<pallas_src>
import jax
import jax.numpy as jnp
from jax.experimental import pallas as pl
from jax.experimental.pallas import tpu as pltpu  # noqa: F401  (TPU backend)


def triplet_embedding_kernel(x1_ref, x2_ref, x3_ref,
                             w1_ref, b1_ref, w2_ref, b2_ref,
                             o1_ref, o2_ref, o3_ref):
    """Weight-tied embedding net applied to all three branches at once.

    x*_ref : (B, D) f32
    w1_ref : (D, H) bf16    b1_ref : (1, H) f32
    w2_ref : (H, E) bf16    b2_ref : (1, E) f32
    o*_ref : (B, E) f32
    """
    B = x1_ref.shape[0]

    # Fold the three branches into the M (batch) dimension: one matmul pair
    # instead of three tiny ones. bf16 operands feed the MXU natively.
    x = jnp.concatenate([x1_ref[...], x2_ref[...], x3_ref[...]], axis=0)
    x = x.astype(jnp.bfloat16)                                      # (3B, D)

    # fc1 + bias + ReLU (f32 accumulate; bias/ReLU on the f32 accumulator).
    h = jnp.dot(x, w1_ref[...], preferred_element_type=jnp.float32)
    h = jnp.maximum(h + b1_ref[...], 0.0)                           # (3B, H) f32

    # fc2 (single deliberate downcast of activations before the MXU).
    out = jnp.dot(h.astype(jnp.bfloat16), w2_ref[...],
                  preferred_element_type=jnp.float32) + b2_ref[...]
    out = out.astype(o1_ref.dtype)                                  # (3B, E)

    o1_ref[...] = out[0 * B:1 * B]
    o2_ref[...] = out[1 * B:2 * B]
    o3_ref[...] = out[2 * B:3 * B]


def triplet_net_forward(x1, x2, x3, params):
    """Pallas implementation of TripletNet.forward(x1, x2, x3)."""
    w1, b1, w2, b2 = params
    B = x1.shape[0]
    D, H = w1.shape
    E = w2.shape[1]

    # Flatten NCHW -> (B, D); the three branches stay separate inputs
    # (no stacked HBM copy).
    x1f = x1.reshape(B, -1)
    x2f = x2.reshape(B, -1)
    x3f = x3.reshape(B, -1)
    assert x1f.shape[-1] == D

    out_dtype = jnp.float32
    flops = 2 * (3 * B) * (D * H + H * E)
    bytes_accessed = (
        3 * B * D * x1f.dtype.itemsize                 # activations in
        + (D * H + H * E) * w1.dtype.itemsize          # bf16 weights
        + (H + E) * b1.dtype.itemsize                  # f32 biases
        + 3 * B * E * jnp.dtype(out_dtype).itemsize    # outputs
    )

    # Grid-less call: whole arrays land in VMEM, kernel body runs once.
    o1, o2, o3 = pl.pallas_call(
        triplet_embedding_kernel,
        out_shape=(
            jax.ShapeDtypeStruct((B, E), out_dtype),
            jax.ShapeDtypeStruct((B, E), out_dtype),
            jax.ShapeDtypeStruct((B, E), out_dtype),
        ),
        cost_estimate=pl.CostEstimate(
            flops=flops, transcendentals=0, bytes_accessed=bytes_accessed),
    )(x1f, x2f, x3f, w1, b1, w2, b2)

    return o1, o2, o3


def embedding_ref(x, params):
    """Pure-JAX reference (TripletNet.get_embedding) with matching dtypes."""
    w1, b1, w2, b2 = params
    xb = x.reshape(x.shape[0], -1).astype(jnp.bfloat16)
    h = jnp.dot(xb, w1, preferred_element_type=jnp.float32) + b1
    h = jnp.maximum(h, 0.0)
    return jnp.dot(h.astype(jnp.bfloat16), w2,
                   preferred_element_type=jnp.float32) + b2


if __name__ == "__main__":
    key = jax.random.PRNGKey(0)

    # Small shapes consistent with the forward: NCHW images.
    B, C, IMG_H, IMG_W = 2, 4, 16, 16
    D = C * IMG_H * IMG_W   # 1024 flattened input dim
    HID = 128               # hidden width (lane-friendly)
    E = 128                 # embedding dim (lane-dense output)

    k_x1, k_x2, k_x3, k_w1, k_b1, k_w2, k_b2 = jax.random.split(key, 7)

    x1 = jax.random.normal(k_x1, (B, C, IMG_H, IMG_W), dtype=jnp.float32)
    x2 = jax.random.normal(k_x2, (B, C, IMG_H, IMG_W), dtype=jnp.float32)
    x3 = jax.random.normal(k_x3, (B, C, IMG_H, IMG_W), dtype=jnp.float32)

    # Deterministic embedding-net parameters: weights stored bf16 (MXU-native
    # on v5e/v6e/v7x), biases f32.
    w1 = (jax.random.normal(k_w1, (D, HID), dtype=jnp.float32)
          * (1.0 / D) ** 0.5).astype(jnp.bfloat16)
    b1 = jax.random.normal(k_b1, (1, HID), dtype=jnp.float32) * 0.01
    w2 = (jax.random.normal(k_w2, (HID, E), dtype=jnp.float32)
          * (1.0 / HID) ** 0.5).astype(jnp.bfloat16)
    b2 = jax.random.normal(k_b2, (1, E), dtype=jnp.float32) * 0.01
    params = (w1, b1, w2, b2)

    o1, o2, o3 = jax.block_until_ready(
        jax.jit(triplet_net_forward)(x1, x2, x3, params)
    )

    # Correctness check against the pure-JAX reference of the embedding net.
    r1 = embedding_ref(x1, params)
    r2 = embedding_ref(x2, params)
    r3 = embedding_ref(x3, params)
    assert o1.shape == (B, E) and o2.shape == (B, E) and o3.shape == (B, E)
    assert jnp.allclose(o1, r1, atol=2e-2, rtol=2e-2)
    assert jnp.allclose(o2, r2, atol=2e-2, rtol=2e-2)
    assert jnp.allclose(o3, r3, atol=2e-2, rtol=2e-2)

    print("KERNEL_OK")
</pallas_src>

<mosaic_0001>
module attributes {stable_mosaic.version = 11 : i64} {
  func.func @triplet_embedding_kernel(%arg0: memref<2x1024xf32, #tpu.memory_space<vmem>>, %arg1: memref<2x1024xf32, #tpu.memory_space<vmem>>, %arg2: memref<2x1024xf32, #tpu.memory_space<vmem>>, %arg3: memref<1024x128xbf16, #tpu.memory_space<vmem>>, %arg4: memref<1x128xf32, #tpu.memory_space<vmem>>, %arg5: memref<128x128xbf16, #tpu.memory_space<vmem>>, %arg6: memref<1x128xf32, #tpu.memory_space<vmem>>, %arg7: memref<2x128xf32, #tpu.memory_space<vmem>>, %arg8: memref<2x128xf32, #tpu.memory_space<vmem>>, %arg9: memref<2x128xf32, #tpu.memory_space<vmem>>) attributes {dimension_semantics = [], scalar_prefetch = 0 : i64, scratch_operands = 0 : i64, tpu.core_type = #tpu.core_type<tc>} {
    %c0 = arith.constant 0 : index
    %c0_0 = arith.constant 0 : index
    %0 = vector.load %arg0[%c0, %c0_0] : memref<2x1024xf32, #tpu.memory_space<vmem>>, vector<2x1024xf32>
    %c0_1 = arith.constant 0 : index
    %c0_2 = arith.constant 0 : index
    %1 = vector.load %arg1[%c0_1, %c0_2] : memref<2x1024xf32, #tpu.memory_space<vmem>>, vector<2x1024xf32>
    %c0_3 = arith.constant 0 : index
    %c0_4 = arith.constant 0 : index
    %2 = vector.load %arg2[%c0_3, %c0_4] : memref<2x1024xf32, #tpu.memory_space<vmem>>, vector<2x1024xf32>
    %3 = tpu.concatenate %0, %1, %2 in 0 : vector<2x1024xf32>, vector<2x1024xf32>, vector<2x1024xf32> -> vector<6x1024xf32>
    %4 = arith.truncf %3 : vector<6x1024xf32> to vector<6x1024xbf16>
    %c0_5 = arith.constant 0 : index
    %c0_6 = arith.constant 0 : index
    %5 = vector.load %arg3[%c0_5, %c0_6] : memref<1024x128xbf16, #tpu.memory_space<vmem>>, vector<1024x128xbf16>
    %cst = arith.constant dense<0.000000e+00> : vector<6x128xf32>
    %6 = tpu.matmul %4, %5, %cst {dimension_numbers = #tpu.dot_dimension_numbers<[1], [0], [0], [1], [0, 0, 1, 1], [], []>} : vector<6x1024xbf16>, vector<1024x128xbf16>, vector<6x128xf32> -> vector<6x128xf32>
    %c0_7 = arith.constant 0 : index
    %c0_8 = arith.constant 0 : index
    %7 = vector.load %arg4[%c0_7, %c0_8] : memref<1x128xf32, #tpu.memory_space<vmem>>, vector<1x128xf32>
    %8 = vector.broadcast %7 : vector<1x128xf32> to vector<6x128xf32>
    %9 = arith.addf %6, %8 : vector<6x128xf32>
    %cst_9 = arith.constant 0.000000e+00 : f32
    %10 = vector.broadcast %cst_9 : f32 to vector<6x128xf32>
    %11 = arith.maximumf %9, %10 : vector<6x128xf32>
    %12 = arith.truncf %11 : vector<6x128xf32> to vector<6x128xbf16>
    %c0_10 = arith.constant 0 : index
    %c0_11 = arith.constant 0 : index
    %13 = vector.load %arg5[%c0_10, %c0_11] : memref<128x128xbf16, #tpu.memory_space<vmem>>, vector<128x128xbf16>
    %cst_12 = arith.constant dense<0.000000e+00> : vector<6x128xf32>
    %14 = tpu.matmul %12, %13, %cst_12 {dimension_numbers = #tpu.dot_dimension_numbers<[1], [0], [0], [1], [0, 0, 1, 1], [], []>} : vector<6x128xbf16>, vector<128x128xbf16>, vector<6x128xf32> -> vector<6x128xf32>
    %c0_13 = arith.constant 0 : index
    %c0_14 = arith.constant 0 : index
    %15 = vector.load %arg6[%c0_13, %c0_14] : memref<1x128xf32, #tpu.memory_space<vmem>>, vector<1x128xf32>
    %16 = vector.broadcast %15 : vector<1x128xf32> to vector<6x128xf32>
    %17 = arith.addf %14, %16 : vector<6x128xf32>
    %18 = vector.extract_strided_slice %17 {offsets = [0, 0], sizes = [2, 128], strides = [1, 1]} : vector<6x128xf32> to vector<2x128xf32>
    %c0_15 = arith.constant 0 : index
    %c0_16 = arith.constant 0 : index
    %19 = vector.load %arg7[%c0_15, %c0_16] : memref<2x128xf32, #tpu.memory_space<vmem>>, vector<2x128xf32>
    tpu.vector_store %arg7[%c0_15, %c0_16], %18 {strides = array<i32>} : memref<2x128xf32, #tpu.memory_space<vmem>>, vector<2x128xf32>,
    %20 = vector.extract_strided_slice %17 {offsets = [2, 0], sizes = [2, 128], strides = [1, 1]} : vector<6x128xf32> to vector<2x128xf32>
    %c0_17 = arith.constant 0 : index
    %c0_18 = arith.constant 0 : index
    %21 = vector.load %arg8[%c0_17, %c0_18] : memref<2x128xf32, #tpu.memory_space<vmem>>, vector<2x128xf32>
    tpu.vector_store %arg8[%c0_17, %c0_18], %20 {strides = array<i32>} : memref<2x128xf32, #tpu.memory_space<vmem>>, vector<2x128xf32>,
    %22 = vector.extract_strided_slice %17 {offsets = [4, 0], sizes = [2, 128], strides = [1, 1]} : vector<6x128xf32> to vector<2x128xf32>
    %c0_19 = arith.constant 0 : index
    %c0_20 = arith.constant 0 : index
    %23 = vector.load %arg9[%c0_19, %c0_20] : memref<2x128xf32, #tpu.memory_space<vmem>>, vector<2x128xf32>
    tpu.vector_store %arg9[%c0_19, %c0_20], %22 {strides = array<i32>} : memref<2x128xf32, #tpu.memory_space<vmem>>, vector<2x128xf32>,
    return
  }
}

</mosaic_0001>

<bundles_post_ra>
// kernel: triplet_net_forward.1
= control target key start
LH: loop header
LB: loop body
LE: loop exit
PB: predicated region body
PF: predicated region fallthrough
CT: control target
= control target key end

     0   :  { %15 = vsyncpa [#allocation3], 0  ;;  %s1527_s0 = inlined_call_operand.vmem [shape: f32[2,1024], index: 0, kind: input, shape index: {}]   ;;  %s1528_s1 = inlined_call_operand.vmem [shape: f32[2,1024], index: 1, kind: input, shape index: {}]   ;;  %s1529_s2 = inlined_call_operand.vmem [shape: f32[2,1024], index: 2, kind: input, shape index: {}]   ;;  %s1530_s3 = inlined_call_operand.hbm [shape: bf16[1024,128], index: 3, kind: input, shape index: {}]   ;;  %s1531_s4 = inlined_call_operand.vmem [shape: f32[1,128], index: 4, kind: input, shape index: {}]   ;;  %s1532_s5 = inlined_call_operand.vmem [shape: bf16[128,128], index: 5, kind: input, shape index: {}]   ;;  %s1533_s6 = inlined_call_operand.vmem [shape: f32[1,128], index: 6, kind: input, shape index: {}]   ;;  %s1534_s7 = inlined_call_operand.hbm [shape: f32[2,128], index: 7, kind: output, shape index: {0}]   ;;  %s1535_s8 = inlined_call_operand.hbm [shape: f32[2,128], index: 8, kind: output, shape index: {1}]   ;;  %s1536_s9 = inlined_call_operand.hbm [shape: f32[2,128], index: 9, kind: output, shape index: {2}]  }
   0x1   :  { %16 = vsyncpa [#allocation4], 0 }
   0x2   :  { %17 = vsyncpa [#allocation7], 0  ;;  %s28_s11 = sshll.u32 %s1530_s3, 4  ;;  %s1368_s12 = smov [#allocation2]   ;;  %s29_s11 = int_to_ptr.hbm [resolvable:$true] %s28_s11 }
   0x3   :  { %s30_s13 = sshll.u32 %s1368_s12, 4  ;;  %s1369_s14 = smov 64   ;;  %s31_s13 = int_to_ptr.vmem [resolvable:$true] %s30_s13 }
   0x4   :  { %s1370_s15 = smov 4  }
   0x5   :  { %36 = dma.hbm_to_vmem [thread:$0]  %s29_s11, 8192, %s31_s13, [#allocation3], %s1369_s14, %s1369_s14, %s1370_s15  }
   0x6   :  { %1362 = dma.done.wait [#allocation3], 8192  }
   0x7   :  { %1363 = vsyncadd [#allocation3], 4294959104  ;;  %v1193_v0 = vld [vmem:[#allocation2 + $0x38] sm:$0xff]  ;;  %v1192_v4 = vld [vmem:[#allocation2 + $0x30] sm:$0xff]  ;;  %vm118_vm0 = vcmask 1041408   ;;  %vm127_vm1 = vcmask 1043456  }
   0x8   :  { %v1201_v1 = vld [vmem:[#allocation2 + $0x78] sm:$0xff]  ;;  %660 = vmatpush.bf16.msra.mxu0 %v1193_v0  ;;  %v1200_v5 = vld [vmem:[#allocation2 + $0x70] sm:$0xff]  ;;  %v1191_v8 = vld [vmem:[#allocation2 + $0x28] sm:$0xff]  ;;  %s1371_s20 = smov [#allocation5]   ;;  %s857_s22 = sshll.u32 %s1534_s7, 4  ;;  %s858_s22 = int_to_ptr.hbm [resolvable:$true] %s857_s22 }
   0x9   :  { %v1209_v2 = vld [vmem:[#allocation2 + $0xb8] sm:$0xff]  ;;  %673 = vmatpush.bf16.msra.mxu1 %v1201_v1  ;;  %v1208_v6 = vld [vmem:[#allocation2 + $0xb0] sm:$0xff]  ;;  %v1199_v9 = vld [vmem:[#allocation2 + $0x68] sm:$0xff]  ;;  %s1372_s23 = smov [#allocation6]   ;;  %s868_s26 = sshll.u32 %s1535_s8, 4  ;;  %s869_s26 = int_to_ptr.hbm [resolvable:$true] %s868_s26 }
   0xa   :  { %v1217_v3 = vld [vmem:[#allocation2 + $0xf8] sm:$0xff]  ;;  %686 = vmatpush.bf16.msra.mxu2 %v1209_v2  ;;  %v1216_v7 = vld [vmem:[#allocation2 + $0xf0] sm:$0xff]  ;;  %v1207_v10 = vld [vmem:[#allocation2 + $0xa8] sm:$0xff]  ;;  %s866_s24 = sshll.u32 %s1372_s23, 4  ;;  %s1373_s27 = smov [#allocation8]   ;;  %s867_s24 = int_to_ptr.vmem [resolvable:$true] %s866_s24 }
   0xb   :  { %699 = vmatpush.bf16.msra.mxu3 %v1217_v3  ;;  %v1215_v11 = vld [vmem:[#allocation2 + $0xe8] sm:$0xff]  ;;  %v1190_v12 = vld [vmem:[#allocation2 + $0x20] sm:$0xff]  ;;  %v47_v16 = vld [vmem:[%s1527_s0] sm:$0xff]  ;;  %s877_s28 = sshll.u32 %s1373_s27, 4  ;;  %s878_s28 = int_to_ptr.vmem [resolvable:$true] %s877_s28 }
   0xc   :  { %661 = vmatpush.bf16.msra.mxu0 %v1192_v4  ;;  %v1198_v13 = vld [vmem:[#allocation2 + $0x60] sm:$0xff]  ;;  %v1189_v17 = vld [vmem:[#allocation2 + $0x18] sm:$0xff]  ;;  %55 = vst [vmem:[#allocation1] ss:$4 sm:$0xff] %v47_v16  ;;  %v1188_v22 = vld [vmem:[#allocation2 + $0x10] sm:$0xff] }
   0xd   :  { %674 = vmatpush.bf16.msra.mxu1 %v1200_v5  ;;  %v1206_v14 = vld [vmem:[#allocation2 + $0xa0] sm:$0xff]  ;;  %v1197_v18 = vld [vmem:[#allocation2 + $0x58] sm:$0xff]  ;;  %v1196_v23 = vld [vmem:[#allocation2 + $0x50] sm:$0xff] }
   0xe   :  { %687 = vmatpush.bf16.msra.mxu2 %v1208_v6  ;;  %v1214_v15 = vld [vmem:[#allocation2 + $0xe0] sm:$0xff]  ;;  %v1205_v19 = vld [vmem:[#allocation2 + $0x98] sm:$0xff]  ;;  %v1204_v24 = vld [vmem:[#allocation2 + $0x90] sm:$0xff] }
   0xf   :  { %700 = vmatpush.bf16.msra.mxu3 %v1216_v7  ;;  %v1213_v20 = vld [vmem:[#allocation2 + $0xd8] sm:$0xff]  ;;  %v48_v21 = vld [vmem:[%s1527_s0 + $0x8] sm:$0xff]  ;;  %v1212_v25 = vld [vmem:[#allocation2 + $0xd0] sm:$0xff]  ;;  %s855_s0 = sshll.u32 %s1371_s20, 4  ;;  %s856_s0 = int_to_ptr.vmem [resolvable:$true] %s855_s0 }
  0x10   :  { %662 = vmatpush.bf16.msra.mxu0 %v1191_v8  ;;  %57 = vst [vmem:[#allocation1 + $0x20] ss:$4 sm:$0xff] %v48_v21  ;;  %v1187_v26 = vld [vmem:[#allocation2 + $0x8] sm:$0xff]  ;;  %v49_v28 = vld [vmem:[%s1528_s1] sm:$0xff]  ;;  %v1186_v35 = vld [vmem:[#allocation2] sm:$0xff] }
  0x11   :  { %675 = vmatpush.bf16.msra.mxu1 %v1199_v9  ;;  %v1195_v27 = vld [vmem:[#allocation2 + $0x48] sm:$0xff]  ;;  %v50_v36 = vld [vmem:[%s1528_s1 + $0x8] sm:$0xff]  ;;  %v1225_v44 = vld [vmem:[#allocation2 + $0x138] sm:$0xff] }
  0x12   :  { %688 = vmatpush.bf16.msra.mxu2 %v1207_v10  ;;  %v1203_v33 = vld [vmem:[#allocation2 + $0x88] sm:$0xff]  ;;  %v1194_v39 = vld [vmem:[#allocation2 + $0x40] sm:$0xff]  ;;  %v1233_v45 = vld [vmem:[#allocation2 + $0x178] sm:$0xff] }
  0x13   :  { %701 = vmatpush.bf16.msra.mxu3 %v1215_v11  ;;  %v1436_v29 = vld.sshfl [vmem:[#allocation1] sm:$0xff pattern:$0x73625140]  ;;  %v1438_v30 = vld.sshfl [vmem:[#allocation1 + $0x8] sm:$0xff pattern:$0x73625140] }
  0x14   :  { %663 = vmatpush.bf16.msra.mxu0 %v1190_v12  ;;  %v60_v31 = vld.sshfl [vmem:[#allocation1 + $0x10] sm:$0xff pattern:$0x73625140]  ;;  %v61_v32 = vld.sshfl [vmem:[#allocation1 + $0x18] sm:$0xff pattern:$0x73625140] }
  0x15   :  { %676 = vmatpush.bf16.msra.mxu1 %v1198_v13  ;;  %v1211_v34 = vld [vmem:[#allocation2 + $0xc8] sm:$0xff]  ;;  %77 = vst [vmem:[#allocation1 + $0x1] ss:$4 sm:$0xff] %v49_v28  ;;  %v1202_v40 = vld [vmem:[#allocation2 + $0x80] sm:$0xff]  ;;  %v1241_v46 = vld [vmem:[#allocation2 + $0x1b8] sm:$0xff] }
  0x16   :  { %689 = vmatpush.bf16.msra.mxu2 %v1206_v14  ;;  %v1210_v41 = vld [vmem:[#allocation2 + $0xc0] sm:$0xff]  ;;  %v1249_v47 = vld [vmem:[#allocation2 + $0x1f8] sm:$0xff]  ;;  %v1224_v53 = vld [vmem:[#allocation2 + $0x130] sm:$0xff] }
  0x17   :  { %702 = vmatpush.bf16.msra.mxu3 %v1214_v15  ;;  %v1443_v37 = vld.sshfl [vmem:[#allocation1 + $0x20] sm:$0xff pattern:$0x73625140]  ;;  %v1445_v38 = vld.sshfl [vmem:[#allocation1 + $0x28] sm:$0xff pattern:$0x73625140] }
  0x18   :  { %664 = vmatpush.bf16.msra.mxu0 %v1189_v17  ;;  %v1447_v42 = vld.sshfl [vmem:[#allocation1 + $0x30] sm:$0xff pattern:$0x73625140]  ;;  %v1449_v43 = vld.sshfl [vmem:[#allocation1 + $0x38] sm:$0xff pattern:$0x73625140] }
  0x19   :  { %677 = vmatpush.bf16.msra.mxu1 %v1197_v18  ;;  %79 = vst [vmem:[#allocation1 + $0x21] ss:$4 sm:$0xff] %v50_v36  ;;  %v51_v48 = vld [vmem:[%s1529_s2] sm:$0xff]  ;;  %v1232_v54 = vld [vmem:[#allocation2 + $0x170] sm:$0xff]  ;;  %v1223_v57 = vld [vmem:[#allocation2 + $0x128] sm:$0xff] }
  0x1a   :  { %690 = vmatpush.bf16.msra.mxu2 %v1205_v19  ;;  %v1240_v55 = vld [vmem:[#allocation2 + $0x1b0] sm:$0xff]  ;;  %v1231_v58 = vld [vmem:[#allocation2 + $0x168] sm:$0xff]  ;;  %v52_v59 = vld [vmem:[%s1529_s2 + $0x8] sm:$0xff] }
  0x1b   :  { %703 = vmatpush.bf16.msra.mxu3 %v1213_v20  ;;  %v1248_v56 = vld [vmem:[#allocation2 + $0x1f0] sm:$0xff]  ;;  %v1239_v1 = vld [vmem:[#allocation2 + $0x1a8] sm:$0xff]  ;;  %v1222_v5 = vld [vmem:[#allocation2 + $0x120] sm:$0xff] }
  0x1c   :  { %665 = vmatpush.bf16.msra.mxu0 %v1188_v22  ;;  %v80_v49 = vld.sshfl [vmem:[#allocation1] sm:$0xff pattern:$0x73625140]  ;;  %v81_v50 = vld.sshfl [vmem:[#allocation1 + $0x8] sm:$0xff pattern:$0x73625140] }
  0x1d   :  { %678 = vmatpush.bf16.msra.mxu1 %v1196_v23  ;;  %v82_v51 = vld.sshfl [vmem:[#allocation1 + $0x10] sm:$0xff pattern:$0x73625140]  ;;  %v83_v52 = vld.sshfl [vmem:[#allocation1 + $0x18] sm:$0xff pattern:$0x73625140]  ;;  %v119_v3 = vsel %vm118_vm0, %v1436_v29, %v80_v49  ;;  %v120_v8 = vsel %vm118_vm0, %v1438_v30, %v81_v50 }
  0x1e   :  { %691 = vmatpush.bf16.msra.mxu2 %v1204_v24  ;;  %99 = vst [vmem:[#allocation1 + $0x2] ss:$4 sm:$0xff] %v51_v48  ;;  %v121_v0 = vsel %vm118_vm0, %v60_v31, %v82_v51  ;;  %v1247_v2 = vld [vmem:[#allocation2 + $0x1e8] sm:$0xff]  ;;  %v122_v4 = vsel %vm118_vm0, %v61_v32, %v83_v52  ;;  %v1238_v16 = vld [vmem:[#allocation2 + $0x1a0] sm:$0xff]  ;;  %v1221_v22 = vld [vmem:[#allocation2 + $0x118] sm:$0xff] }
  0x1f   :  { %704 = vmatpush.bf16.msra.mxu3 %v1212_v25  ;;  %v1230_v19 = vld [vmem:[#allocation2 + $0x160] sm:$0xff]  ;;  %v1237_v23 = vld [vmem:[#allocation2 + $0x198] sm:$0xff]  ;;  %v1228_v28 = vld [vmem:[#allocation2 + $0x150] sm:$0xff] }
  0x20   :  { %666 = vmatpush.bf16.msra.mxu0 %v1187_v26  ;;  %v84_v60 = vld.sshfl [vmem:[#allocation1 + $0x20] sm:$0xff pattern:$0x73625140]  ;;  %v1457_v61 = vld.sshfl [vmem:[#allocation1 + $0x28] sm:$0xff pattern:$0x73625140] }
  0x21   :  { %679 = vmatpush.bf16.msra.mxu1 %v1195_v27  ;;  %v1459_v62 = vld.sshfl [vmem:[#allocation1 + $0x30] sm:$0xff pattern:$0x73625140]  ;;  %v1461_v63 = vld.sshfl [vmem:[#allocation1 + $0x38] sm:$0xff pattern:$0x73625140] }
  0x22   :  { %692 = vmatpush.bf16.msra.mxu2 %v1203_v33  ;;  %101 = vst [vmem:[#allocation1 + $0x22] ss:$4 sm:$0xff] %v52_v59  ;;  %v1246_v20 = vld [vmem:[#allocation2 + $0x1e0] sm:$0xff]  ;;  %v1229_v24 = vld [vmem:[#allocation2 + $0x158] sm:$0xff]  ;;  %v1220_v26 = vld [vmem:[#allocation2 + $0x110] sm:$0xff]  ;;  %v123_v33 = vsel %vm118_vm0, %v1443_v37, %v84_v60 }
  0x23   :  { %705 = vmatpush.bf16.msra.mxu3 %v1211_v34  ;;  %v1245_v25 = vld [vmem:[#allocation2 + $0x1d8] sm:$0xff]  ;;  %v1236_v27 = vld [vmem:[#allocation2 + $0x190] sm:$0xff]  ;;  %v1219_v30 = vld [vmem:[#allocation2 + $0x108] sm:$0xff] }
  0x24   :  { %667 = vmatpush.bf16.msra.mxu0 %v1186_v35  ;;  %v1244_v29 = vld [vmem:[#allocation2 + $0x1d0] sm:$0xff]  ;;  %v1235_v31 = vld [vmem:[#allocation2 + $0x188] sm:$0xff]  ;;  %v1218_v37 = vld [vmem:[#allocation2 + $0x100] sm:$0xff] }
  0x25   :  { %680 = vmatpush.bf16.msra.mxu1 %v1194_v39  ;;  %v104_v6 = vld.sshfl [vmem:[#allocation1 + $0x10] sm:$0xff pattern:$0x73625140]  ;;  %v102_v7 = vld.sshfl [vmem:[#allocation1] sm:$0xff pattern:$0x73625140]  ;;  %v125_v39 = vsel %vm118_vm0, %v1447_v42, %v1459_v62 }
  0x26   :  { %693 = vmatpush.bf16.msra.mxu2 %v1202_v40  ;;  %v130_v9 = vsel %vm127_vm1, %v121_v0, %v104_v6  ;;  %v128_v10 = vsel %vm127_vm1, %v119_v3, %v102_v7  ;;  %v105_v11 = vld.sshfl [vmem:[#allocation1 + $0x18] sm:$0xff pattern:$0x73625140]  ;;  %v103_v12 = vld.sshfl [vmem:[#allocation1 + $0x8] sm:$0xff pattern:$0x73625140] }
  0x27   :  { %706 = vmatpush.bf16.msra.mxu3 %v1210_v41  ;;  %v138_v13 = vpack.c.bf16 %v130_v9, %v130_v9  ;;  %v136_v14 = vpack.c.bf16 %v128_v10, %v128_v10  ;;  %v131_v15 = vsel %vm127_vm1, %v122_v4, %v105_v11  ;;  %v129_v18 = vsel %vm127_vm1, %v120_v8, %v103_v12  ;;  %v1227_v34 = vld [vmem:[#allocation2 + $0x148] sm:$0xff]  ;;  %v1226_v42 = vld [vmem:[#allocation2 + $0x140] sm:$0xff]  ;;  %v1264_v0 = vld [vmem:[%s1531_s4] ss:$0 sm:$0xff] }
  0x28   :  { %712 = vmatpush.bf16.msrb.mxu0 %v1225_v44  ;;  %v139_v17 = vpack.c.bf16 %v131_v15, %v131_v15  ;;  %v137_v21 = vpack.c.bf16 %v129_v18, %v129_v18  ;;  %v1243_v35 = vld [vmem:[#allocation2 + $0x1c8] sm:$0xff]  ;;  %v124_v41 = vsel %vm118_vm0, %v1445_v38, %v1457_v61  ;;  %v1242_v49 = vld [vmem:[#allocation2 + $0x1c0] sm:$0xff] }
  0x29   :  { %725 = vmatpush.bf16.msrb.mxu1 %v1233_v45  ;;  %694 = vmatmul.bf16.vlgmr.msra.gmra.mxu2 %v138_v13  ;;  %v106_v32 = vld.sshfl [vmem:[#allocation1 + $0x20] sm:$0xff pattern:$0x73625140]  ;;  %v108_v36 = vld.sshfl [vmem:[#allocation1 + $0x30] sm:$0xff pattern:$0x73625140]  ;;  %v126_v45 = vsel %vm118_vm0, %v1449_v43, %v1461_v63 }
  0x2a   :  { %738 = vmatpush.bf16.msrb.mxu2 %v1241_v46  ;;  %668 = vmatmul.bf16.vlgmr.msra.gmra.mxu0 %v136_v14  ;;  %v107_v40 = vld.sshfl [vmem:[#allocation1 + $0x28] sm:$0xff pattern:$0x73625140]  ;;  %v109_v44 = vld.sshfl [vmem:[#allocation1 + $0x38] sm:$0xff pattern:$0x73625140]  ;;  %v132_v46 = vsel %vm127_vm1, %v123_v33, %v106_v32  ;;  %v134_v48 = vsel %vm127_vm1, %v125_v39, %v108_v36 }
  0x2b   :  { %751 = vmatpush.bf16.msrb.mxu3 %v1249_v47  ;;  %681 = vmatmul.bf16.vlgmr.msra.gmra.mxu1 %v137_v21  ;;  %v1234_v47 = vld [vmem:[#allocation2 + $0x180] sm:$0xff]  ;;  %v133_v50 = vsel %vm127_vm1, %v124_v41, %v107_v40  ;;  %v135_v38 = vsel %vm127_vm1, %v126_v45, %v109_v44  ;;  %v140_v51 = vpack.c.bf16 %v132_v46, %v132_v46  ;;  %v1252_v59 = vld [vmem:[%s1532_s5 + $0x10] sm:$0xff]  ;;  %v1250_v63 = vld [vmem:[%s1532_s5] sm:$0xff] }
  0x2c   :  { %713 = vmatpush.bf16.msrb.mxu0 %v1224_v53  ;;  %707 = vmatmul.bf16.vlgmr.msra.gmra.mxu3 %v139_v17  ;;  %v142_v52 = vpack.c.bf16 %v134_v48, %v134_v48  ;;  %v141_v43 = vpack.c.bf16 %v133_v50, %v133_v50  ;;  %v143_v53 = vpack.c.bf16 %v135_v38, %v135_v38  ;;  %v1251_v60 = vld [vmem:[%s1532_s5 + $0x8] sm:$0xff] }
  0x2d   :  { %726 = vmatpush.bf16.msrb.mxu1 %v1232_v54  ;;  %v1257_v54 = vld [vmem:[%s1532_s5 + $0x38] sm:$0xff] }
  0x2e   :  { %739 = vmatpush.bf16.msrb.mxu2 %v1240_v55  ;;  %v1256_v55 = vld [vmem:[%s1532_s5 + $0x30] sm:$0xff] }
  0x2f   :  { %752 = vmatpush.bf16.msrb.mxu3 %v1248_v56  ;;  %v1255_v56 = vld [vmem:[%s1532_s5 + $0x28] sm:$0xff] }
  0x30   :  { %714 = vmatpush.bf16.msrb.mxu0 %v1223_v57  ;;  %v1254_v57 = vld [vmem:[%s1532_s5 + $0x20] sm:$0xff] }
  0x31   :  { %727 = vmatpush.bf16.msrb.mxu1 %v1231_v58  ;;  %v1253_v58 = vld [vmem:[%s1532_s5 + $0x18] sm:$0xff] }
  0x32   :  { %740 = vmatpush.bf16.msrb.mxu2 %v1239_v1 }
  0x33   :  { %753 = vmatpush.bf16.msrb.mxu3 %v1247_v2 }
  0x34   :  { %715 = vmatpush.bf16.msrb.mxu0 %v1222_v5 }
  0x35   :  { %728 = vmatpush.bf16.msrb.mxu1 %v1230_v19 }
  0x36   :  { %741 = vmatpush.bf16.msrb.mxu2 %v1238_v16 }
  0x37   :  { %754 = vmatpush.bf16.msrb.mxu3 %v1246_v20 }
  0x38   :  { %716 = vmatpush.bf16.msrb.mxu0 %v1221_v22 }
  0x39   :  { %729 = vmatpush.bf16.msrb.mxu1 %v1229_v24 }
  0x3a   :  { %742 = vmatpush.bf16.msrb.mxu2 %v1237_v23 }
  0x3b   :  { %755 = vmatpush.bf16.msrb.mxu3 %v1245_v25  ;;  %v1265_v25 = vld [vmem:[%s1533_s6] ss:$0 sm:$0xff]  ;;  %s879_s6 = sshll.u32 %s1536_s9, 4  ;;  %s880_s6 = int_to_ptr.hbm [resolvable:$true] %s879_s6 }
  0x3c   :  { %717 = vmatpush.bf16.msrb.mxu0 %v1220_v26 }
  0x3d   :  { %730 = vmatpush.bf16.msrb.mxu1 %v1228_v28 }
  0x3e   :  { %743 = vmatpush.bf16.msrb.mxu2 %v1236_v27 }
  0x3f   :  { %756 = vmatpush.bf16.msrb.mxu3 %v1244_v29 }
  0x40   :  { %718 = vmatpush.bf16.msrb.mxu0 %v1219_v30 }
  0x41   :  { %731 = vmatpush.bf16.msrb.mxu1 %v1227_v34 }
  0x42   :  { %744 = vmatpush.bf16.msrb.mxu2 %v1235_v31 }
  0x43   :  { %757 = vmatpush.bf16.msrb.mxu3 %v1243_v35 }
  0x44   :  { %719 = vmatpush.bf16.msrb.mxu0 %v1218_v37 }
  0x45   :  { %732 = vmatpush.bf16.msrb.mxu1 %v1226_v42 }
  0x46   :  { %745 = vmatpush.bf16.msrb.mxu2 %v1234_v47 }
  0x47   :  { %758 = vmatpush.bf16.msrb.mxu3 %v1242_v49  ;;  %720 = vmatmul.bf16.vlgmr.msrb.gmra.mxu0 %v140_v51 }
  0x48   :  { %733 = vmatmul.bf16.vlgmr.msrb.gmra.mxu1 %v141_v43  ;;  %834 = vmatpush.bf16.msra.mxu0 %v1257_v54 }
  0x49   :  { %746 = vmatmul.bf16.vlgmr.msrb.gmra.mxu2 %v142_v52 }
  0x4a   :  { %759 = vmatmul.bf16.vlgmr.msrb.gmra.mxu3 %v143_v53 }
  0x4c   :  { %835 = vmatpush.bf16.msra.mxu0 %v1256_v55 }
  0x50   :  { %836 = vmatpush.bf16.msra.mxu0 %v1255_v56 }
  0x54   :  { %837 = vmatpush.bf16.msra.mxu0 %v1254_v57 }
  0x58   :  { %838 = vmatpush.bf16.msra.mxu0 %v1253_v58 }
  0x5c   :  { %839 = vmatpush.bf16.msra.mxu0 %v1252_v59 }
  0x60   :  { %840 = vmatpush.bf16.msra.mxu0 %v1251_v60 }
  0x64   :  { %841 = vmatpush.bf16.msra.mxu0 %v1250_v63 }
  0xa7   :  { %v669_v61 = vpop.f32.mrf.mxu0 }
  0xa8   :  { %v682_v62 = vpop.f32.mrf.mxu1  ;;  %v670_v3 = vadd.f32 %v1264_v0, %v669_v61 }
  0xaa   :  { %v683_v6 = vadd.f32 %v682_v62, %v670_v3 }
  0xac   :  { %v695_v1 = vpop.f32.mrf.mxu2 }
  0xad   :  { %v696_v9 = vadd.f32 %v695_v1, %v683_v6 }
  0xaf   :  { %v708_v2 = vpop.f32.mrf.mxu3  ;;  %v671_v4 = vpop.f32.mrf.mxu0 }
  0xb0   :  { %v684_v5 = vpop.f32.mrf.mxu1  ;;  %v709_v10 = vadd.f32 %v708_v2, %v696_v9 }
  0xb4   :  { %v697_v7 = vpop.f32.mrf.mxu2 }
  0xb7   :  { %v710_v8 = vpop.f32.mrf.mxu3 }
  0xc4   :  { %v721_v11 = vpop.f32.mrf.mxu0 }
  0xc5   :  { %v722_v12 = vadd.f32 %v721_v11, %v709_v10  ;;  %v734_v13 = vpop.f32.mrf.mxu1 }
  0xc7   :  { %v735_v14 = vadd.f32 %v734_v13, %v722_v12 }
  0xcc   :  { %v747_v15 = vpop.f32.mrf.mxu2  ;;  %v723_v18 = vpop.f32.mrf.mxu0 }
  0xcd   :  { %v748_v16 = vadd.f32 %v747_v15, %v735_v14  ;;  %v760_v17 = vpop.f32.mrf.mxu3  ;;  %v736_v20 = vpop.f32.mrf.mxu1 }
  0xcf   :  { %v761_v19 = vadd.f32 %v760_v17, %v748_v16 }
  0xd1   :  { %v764_v21 = vmax.f32 %v761_v19, 0.0 }
  0xd3   :  { %v765_v22 = vpack.c.bf16 %v764_v21, %v764_v21 }
  0xd4   :  { %v749_v23 = vpop.f32.mrf.mxu2 }
  0xd5   :  { %v762_v24 = vpop.f32.mrf.mxu3  ;;  %842 = vmatmul.bf16.vlgmr.msra.gmra.mxu0 %v765_v22 }
 0x152   :  { %v843_v26 = vpop.f32.mrf.mxu0 }
 0x153   :  { %v844_v27 = vadd.f32 %v1265_v25, %v843_v26 }
 0x155   :  { %849 = vst [vmem:[#allocation8 - $0x4] sm:$0x30] %v844_v27 }
 0x156   :  { %847 = vst [vmem:[#allocation5] sm:$0x3] %v844_v27 }
 0x157   :  { %848 = vst [vmem:[#allocation6 - $0x2] sm:$0xc] %v844_v27  ;;  %860 = dma.vmem_to_hbm [thread:$0]  %s856_s0, 32, %s858_s22, [#allocation4]  }
 0x158   :  { %871 = dma.vmem_to_hbm [thread:$0]  %s867_s24, 32, %s869_s26, [#allocation7]  }
 0x159   :  { %882 = dma.vmem_to_hbm [thread:$0]  %s878_s28, 32, %s880_s6, [#allocation7]  }
 0x15a   :  { %v845_v28 = vpop.f32.mrf.mxu0 }
 0x15b   :  { %1364 = dma.done.wait [#allocation4], 32  }
 0x15c   :  { %1365 = vsyncadd [#allocation4], 4294967264 }
 0x15d   :  { %1366 = dma.done.wait [#allocation7], 64  }
 0x15e   :  { %1367 = vsyncadd [#allocation7], 4294967232 }
 0x15f   :  { %895 = vsyncpa [#allocation3], 1 }
 0x160   :  { %896 = vsyncpa [#allocation4], 1 }
 0x161   :  { %897 = vsyncpa [#allocation7], 1 }

</bundles_post_ra>
